<compile_context>
chip_gen: v5e
topology: v5e:2x2
jax: 0.10.0
libtpu: 0.0.40
codegen_flags: <defaults>
</compile_context>

<pallas_src>
import math

import jax
import jax.numpy as jnp
from jax import lax
from jax.experimental import pallas as pl
from jax.experimental.pallas import tpu as pltpu

# ---- scaled-down BERT config (bert-base-chinese scaled to small sizes) ----
BATCH = 2
SEQ = 8
HIDDEN = 32          # stands in for 768
HEADS = 2            # stands in for 12
HEAD_DIM = HIDDEN // HEADS
INTER = 64           # stands in for 3072
LAYERS = 2           # stands in for 12
VOCAB = 100
TYPE_VOCAB = 2
MAX_POS = 64
NUM_CLASSES = 6
PAD_CLASSES = 128    # lane-dense classifier output slab (sliced to 6 outside)
LN_EPS = 1e-12
NEG_INF = -1e9


# ----------------------------- in-kernel helpers -----------------------------

def _layernorm(x, gamma, beta):
    mean = jnp.mean(x, axis=-1, keepdims=True)
    var = jnp.mean((x - mean) ** 2, axis=-1, keepdims=True)
    return (x - mean) * lax.rsqrt(var + LN_EPS) * gamma + beta


def _gelu(y):
    # tanh-approximate GELU (EUP-friendly).
    # TODO(synk): HF BERT uses erf-GELU; tanh approximation deviates slightly.
    return 0.5 * y * (1.0 + jnp.tanh(0.7978845608028654 * (y + 0.044715 * y * y * y)))


# ----------------------------- Pallas kernels -----------------------------

def _layernorm_kernel(x_ref, g_ref, b_ref, o_ref):
    """LayerNorm-only (no residual) for the embedding output."""
    o_ref[...] = _layernorm(x_ref[...], g_ref[...], b_ref[...]).astype(o_ref.dtype)


def layernorm(x, gamma, beta):
    M, H = x.shape
    return pl.pallas_call(
        _layernorm_kernel,
        out_shape=jax.ShapeDtypeStruct((M, H), jnp.float32),
    )(x, gamma.reshape(1, H), beta.reshape(1, H))


def _encoder_layer_kernel(x_ref, bias_ref, wqkv_ref, bqkv_ref, wo_ref, bo_ref,
                          ln1g_ref, ln1b_ref, w1_ref, b1_ref, w2_ref, b2_ref,
                          ln2g_ref, ln2b_ref, o_ref):
    """One full BERT encoder layer for a single batch element (S tokens)."""
    x = x_ref[...]                                   # (S, H)
    bias = bias_ref[0]                               # (1, S) additive attention bias

    # Fused QKV projection: one (S,H) x (H,3H) MXU matmul instead of three.
    qkv = jnp.dot(x, wqkv_ref[...], preferred_element_type=jnp.float32) + bqkv_ref[...]

    # Per-head attention. Heads are contiguous HEAD_DIM-lane slices of the
    # hidden axis; the output projection is folded into the head loop as
    # sum_h ctx_h @ wo[h*Dh:(h+1)*Dh, :], so no concat/transpose is needed.
    wo = wo_ref[...]
    scale = 1.0 / math.sqrt(HEAD_DIM)
    acc = jnp.zeros((SEQ, HIDDEN), jnp.float32)
    for h in range(HEADS):
        q = qkv[:, h * HEAD_DIM:(h + 1) * HEAD_DIM]
        k = qkv[:, HIDDEN + h * HEAD_DIM:HIDDEN + (h + 1) * HEAD_DIM]
        v = qkv[:, 2 * HIDDEN + h * HEAD_DIM:2 * HIDDEN + (h + 1) * HEAD_DIM]
        s = jnp.dot(q, k.T, preferred_element_type=jnp.float32) * scale + bias
        m = jnp.max(s, axis=-1, keepdims=True)
        p = jnp.exp(s - m)
        p = p * pl.reciprocal(jnp.sum(p, axis=-1, keepdims=True), approx=True)
        ctx = jnp.dot(p, v, preferred_element_type=jnp.float32)          # (S, Dh)
        acc = acc + jnp.dot(ctx, wo[h * HEAD_DIM:(h + 1) * HEAD_DIM, :],
                            preferred_element_type=jnp.float32)
    attn_out = acc + bo_ref[...]

    # Add & LayerNorm 1 (fused; no HBM roundtrip).
    h1 = _layernorm(x + attn_out, ln1g_ref[...], ln1b_ref[...])

    # FFN: dense + GELU, dense, add & LayerNorm 2 -- all resident in VMEM.
    ffn = jnp.dot(h1, w1_ref[...], preferred_element_type=jnp.float32) + b1_ref[...]
    ffn = _gelu(ffn)
    ffn = jnp.dot(ffn, w2_ref[...], preferred_element_type=jnp.float32) + b2_ref[...]
    o_ref[...] = _layernorm(h1 + ffn, ln2g_ref[...], ln2b_ref[...]).astype(o_ref.dtype)


def encoder_layer(x, attn_bias, lp):
    M, H = x.shape
    B = M // SEQ

    def rep2(shape):            # replicated (non-batched) 2-D operand
        return pl.BlockSpec(shape, lambda b: (0, 0))

    in_specs = [
        pl.BlockSpec((SEQ, HIDDEN), lambda b: (b, 0)),        # x (per-batch block)
        pl.BlockSpec((1, 1, SEQ), lambda b: (b, 0, 0)),       # attention bias
        rep2((HIDDEN, 3 * HIDDEN)),                           # wqkv
        rep2((1, 3 * HIDDEN)),                                # bqkv
        rep2((HIDDEN, HIDDEN)),                               # wo
        rep2((1, HIDDEN)),                                    # bo
        rep2((1, HIDDEN)), rep2((1, HIDDEN)),                 # ln1 gamma/beta
        rep2((HIDDEN, INTER)),                                # w1
        rep2((1, INTER)),                                     # b1
        rep2((INTER, HIDDEN)),                                # w2
        rep2((1, HIDDEN)),                                    # b2
        rep2((1, HIDDEN)), rep2((1, HIDDEN)),                 # ln2 gamma/beta
    ]
    return pl.pallas_call(
        _encoder_layer_kernel,
        out_shape=jax.ShapeDtypeStruct((M, HIDDEN), jnp.float32),
        grid=(B,),
        in_specs=in_specs,
        out_specs=pl.BlockSpec((SEQ, HIDDEN), lambda b: (b, 0)),
        compiler_params=pltpu.CompilerParams(dimension_semantics=("parallel",)),
    )(x, attn_bias,
      lp["wqkv"], lp["bqkv"].reshape(1, -1),
      lp["wo"], lp["bo"].reshape(1, -1),
      lp["ln1_g"].reshape(1, -1), lp["ln1_b"].reshape(1, -1),
      lp["w1"], lp["b1"].reshape(1, -1),
      lp["w2"], lp["b2"].reshape(1, -1),
      lp["ln2_g"].reshape(1, -1), lp["ln2_b"].reshape(1, -1))


def _head_kernel(cls_ref, pw_ref, pb_ref, cw_ref, cb_ref, o_ref):
    """Fused pooler (dense+tanh) + classifier (dense+ReLU), lane-padded output."""
    pooled = jnp.tanh(jnp.dot(cls_ref[...], pw_ref[...],
                              preferred_element_type=jnp.float32) + pb_ref[...])
    # Dropout(p=0.5) is identity at inference time (eval mode).
    # TODO(synk): training-mode dropout with PRNG masking not implemented.
    logits = jnp.dot(pooled, cw_ref[...], preferred_element_type=jnp.float32) + cb_ref[...]
    o_ref[...] = jnp.maximum(logits, 0.0).astype(o_ref.dtype)


def pooler_classifier(cls_tok, pw, pb, cw_pad, cb_pad):
    B, H = cls_tok.shape
    N = cw_pad.shape[1]
    out = pl.pallas_call(
        _head_kernel,
        out_shape=jax.ShapeDtypeStruct((B, N), jnp.float32),
    )(cls_tok, pw, pb.reshape(1, H), cw_pad, cb_pad.reshape(1, N))
    return out[:, :NUM_CLASSES]


# ----------------------------- parameters -----------------------------

def init_params(key):
    def norm(k, shape):
        return 0.02 * jax.random.normal(k, shape, jnp.float32)

    keys = jax.random.split(key, 8 + LAYERS * 8)
    it = iter(keys)
    p = {
        "word_emb": norm(next(it), (VOCAB, HIDDEN)),
        "pos_emb": norm(next(it), (MAX_POS, HIDDEN)),
        "type_emb": norm(next(it), (TYPE_VOCAB, HIDDEN)),
        "emb_ln_g": jnp.ones((HIDDEN,), jnp.float32),
        "emb_ln_b": jnp.zeros((HIDDEN,), jnp.float32),
        "pooler_w": norm(next(it), (HIDDEN, HIDDEN)),
        "pooler_b": jnp.zeros((HIDDEN,), jnp.float32),
        "layers": [],
    }
    cls_w = norm(next(it), (HIDDEN, NUM_CLASSES))
    cls_b = jnp.zeros((NUM_CLASSES,), jnp.float32)
    # Lane-padded classifier weights so the kernel output store is unmasked;
    # the wrapper slices back to NUM_CLASSES.
    p["cls_w_pad"] = jnp.pad(cls_w, ((0, 0), (0, PAD_CLASSES - NUM_CLASSES)))
    p["cls_b_pad"] = jnp.pad(cls_b, (0, PAD_CLASSES - NUM_CLASSES))

    for _ in range(LAYERS):
        wq = norm(next(it), (HIDDEN, HIDDEN))
        wk = norm(next(it), (HIDDEN, HIDDEN))
        wv = norm(next(it), (HIDDEN, HIDDEN))
        p["layers"].append({
            # fused QKV projection weights
            "wqkv": jnp.concatenate([wq, wk, wv], axis=1),
            "bqkv": jnp.zeros((3 * HIDDEN,), jnp.float32),
            "wo": norm(next(it), (HIDDEN, HIDDEN)), "bo": jnp.zeros((HIDDEN,), jnp.float32),
            "ln1_g": jnp.ones((HIDDEN,), jnp.float32), "ln1_b": jnp.zeros((HIDDEN,), jnp.float32),
            "w1": norm(next(it), (HIDDEN, INTER)), "b1": jnp.zeros((INTER,), jnp.float32),
            "w2": norm(next(it), (INTER, HIDDEN)), "b2": jnp.zeros((HIDDEN,), jnp.float32),
            "ln2_g": jnp.ones((HIDDEN,), jnp.float32), "ln2_b": jnp.zeros((HIDDEN,), jnp.float32),
        })
    return p


# ----------------------------- forward -----------------------------

def bert_classifier_forward(params, input_ids, mask):
    B, S = input_ids.shape

    # Embeddings (gather is glue in plain JAX), then a LayerNorm-only kernel.
    # TODO(synk): token_type_ids are hard-coded to segment 0.
    pos = jnp.arange(S)
    emb = (params["word_emb"][input_ids]
           + params["pos_emb"][pos][None, :, :]
           + params["type_emb"][jnp.zeros((B, S), jnp.int32)])
    x = emb.reshape(B * S, HIDDEN)
    x = layernorm(x, params["emb_ln_g"], params["emb_ln_b"])

    # Additive attention-mask bias, one row per batch; broadcast over heads and
    # query rows inside the fused layer kernel.
    attn_bias = ((1.0 - mask.astype(jnp.float32)) * NEG_INF).reshape(B, 1, S)

    # One fused pallas_call per encoder layer.
    for lp in params["layers"]:
        x = encoder_layer(x, attn_bias, lp)

    # BERT pooler + classifier head, fused into one kernel on the [CLS] token.
    cls = x.reshape(B, S, HIDDEN)[:, 0, :]                                 # (B, H)
    logits = pooler_classifier(cls, params["pooler_w"], params["pooler_b"],
                               params["cls_w_pad"], params["cls_b_pad"])   # (B, 6)
    return logits


if __name__ == "__main__":
    key = jax.random.PRNGKey(0)
    k_params, k_ids = jax.random.split(key)

    params = init_params(k_params)
    input_ids = jax.random.randint(k_ids, (BATCH, SEQ), 0, VOCAB, dtype=jnp.int32)
    mask = jnp.array([[1] * SEQ, [1] * (SEQ - 2) + [0] * 2], dtype=jnp.int32)

    out = bert_classifier_forward(params, input_ids, mask)
    out = jax.block_until_ready(out)
    assert out.shape == (BATCH, NUM_CLASSES)
    print("KERNEL_OK")
</pallas_src>

<mosaic_0001>
module attributes {stable_mosaic.version = 11 : i64} {
  func.func @_layernorm_kernel(%arg0: memref<16x32xf32, #tpu.memory_space<vmem>>, %arg1: memref<1x32xf32, #tpu.memory_space<vmem>>, %arg2: memref<1x32xf32, #tpu.memory_space<vmem>>, %arg3: memref<16x32xf32, #tpu.memory_space<vmem>>) attributes {dimension_semantics = [], scalar_prefetch = 0 : i64, scratch_operands = 0 : i64, tpu.core_type = #tpu.core_type<tc>} {
    %c0 = arith.constant 0 : index
    %c0_0 = arith.constant 0 : index
    %0 = vector.load %arg0[%c0, %c0_0] : memref<16x32xf32, #tpu.memory_space<vmem>>, vector<16x32xf32>
    %c0_1 = arith.constant 0 : index
    %c0_2 = arith.constant 0 : index
    %1 = vector.load %arg1[%c0_1, %c0_2] : memref<1x32xf32, #tpu.memory_space<vmem>>, vector<1x32xf32>
    %c0_3 = arith.constant 0 : index
    %c0_4 = arith.constant 0 : index
    %2 = vector.load %arg2[%c0_3, %c0_4] : memref<1x32xf32, #tpu.memory_space<vmem>>, vector<1x32xf32>
    %cst = arith.constant dense<0.000000e+00> : vector<16xf32>
    %3 = vector.multi_reduction <add>, %0, %cst [1] : vector<16x32xf32> to vector<16xf32>
    %4 = vector.shape_cast %3 : vector<16xf32> to vector<16x1xf32>
    %cst_5 = arith.constant 3.200000e+01 : f32
    %5 = vector.broadcast %cst_5 : f32 to vector<16x1xf32>
    %6 = arith.divf %4, %5 : vector<16x1xf32>
    %7 = vector.broadcast %6 : vector<16x1xf32> to vector<16x32xf32>
    %8 = arith.subf %0, %7 : vector<16x32xf32>
    %9 = arith.mulf %8, %8 : vector<16x32xf32>
    %cst_6 = arith.constant dense<0.000000e+00> : vector<16xf32>
    %10 = vector.multi_reduction <add>, %9, %cst_6 [1] : vector<16x32xf32> to vector<16xf32>
    %11 = vector.shape_cast %10 : vector<16xf32> to vector<16x1xf32>
    %cst_7 = arith.constant 3.200000e+01 : f32
    %12 = vector.broadcast %cst_7 : f32 to vector<16x1xf32>
    %13 = arith.divf %11, %12 : vector<16x1xf32>
    %14 = vector.broadcast %6 : vector<16x1xf32> to vector<16x32xf32>
    %15 = arith.subf %0, %14 : vector<16x32xf32>
    %cst_8 = arith.constant 9.99999996E-13 : f32
    %16 = vector.broadcast %cst_8 : f32 to vector<16x1xf32>
    %17 = arith.addf %13, %16 : vector<16x1xf32>
    %18 = math.rsqrt %17 : vector<16x1xf32>
    %19 = vector.broadcast %18 : vector<16x1xf32> to vector<16x32xf32>
    %20 = arith.mulf %15, %19 : vector<16x32xf32>
    %21 = vector.broadcast %1 : vector<1x32xf32> to vector<16x32xf32>
    %22 = arith.mulf %20, %21 : vector<16x32xf32>
    %23 = vector.broadcast %2 : vector<1x32xf32> to vector<16x32xf32>
    %24 = arith.addf %22, %23 : vector<16x32xf32>
    %c0_9 = arith.constant 0 : index
    %c0_10 = arith.constant 0 : index
    %25 = vector.load %arg3[%c0_9, %c0_10] : memref<16x32xf32, #tpu.memory_space<vmem>>, vector<16x32xf32>
    tpu.vector_store %arg3[%c0_9, %c0_10], %24 {strides = array<i32>} : memref<16x32xf32, #tpu.memory_space<vmem>>, vector<16x32xf32>,
    return
  }
}

</mosaic_0001>

<bundles_post_ra>
// kernel: tpu_custom_call.1
= control target key start
LH: loop header
LB: loop body
LE: loop exit
PB: predicated region body
PF: predicated region fallthrough
CT: control target
= control target key end

     0   :  { %8 = vsyncpa [#allocation3], 0  ;;  %s275_s0 = inlined_call_operand.hbm [shape: f32[16,32], index: 0, kind: input, shape index: {}]   ;;  %s276_s1 = inlined_call_operand.hbm [shape: f32[1,32], index: 1, kind: input, shape index: {}]   ;;  %s277_s2 = inlined_call_operand.vmem [shape: f32[1,32], index: 2, kind: input, shape index: {}]   ;;  %s278_s3 = inlined_call_operand.hbm [shape: f32[16,32], index: 3, kind: output, shape index: {}]  }
   0x1   :  { %9 = vsyncpa [#allocation6], 0 }
   0x2   :  { %10 = vsyncpa [#allocation4], 0  ;;  %s15_s14 = sshll.u32 %s275_s0, 4  ;;  %s225_s15 = smov [#allocation2]   ;;  %s16_s14 = int_to_ptr.hbm [resolvable:$true] %s15_s14 }
   0x3   :  { %s17_s16 = sshll.u32 %s225_s15, 4  ;;  %s29_s19 = sshll.u32 %s276_s1, 4  ;;  %s18_s16 = int_to_ptr.vmem [resolvable:$true] %s17_s16  ;;  %s30_s19 = int_to_ptr.hbm [resolvable:$true] %s29_s19 }
   0x4   :  { %s226_s20 = smov 128   ;;  %s227_s21 = smov 8  }
   0x5   :  { %23 = dma.hbm_to_vmem [thread:$0]  %s16_s14, 256, %s18_s16, [#allocation3], %s226_s20, %s226_s20, %s227_s21  }
   0x6   :  { %s228_s22 = smov [#allocation5]  }
   0x7   :  { %s31_s23 = sshll.u32 %s228_s22, 4  ;;  %s32_s23 = int_to_ptr.vmem [resolvable:$true] %s31_s23 }
   0x8   :  { %34 = dma.hbm_to_vmem [thread:$0]  %s30_s19, 16, %s32_s23, [#allocation6]  }
   0x9   :  { %219 = dma.done.wait [#allocation3], 256  }
   0xa   :  { %220 = vsyncadd [#allocation3], 4294967040 }
   0xb   :  { %221 = dma.done.wait [#allocation6], 16  }
   0xc   :  { %222 = vsyncadd [#allocation6], 4294967280  ;;  %vm49_vm0 = vcmask 261120   ;;  %v45_v0 = vld [vmem:[#allocation2] sm:$0xff]  ;;  %v46_v2 = vld [vmem:[#allocation2 + $0x8] sm:$0xff]  ;;  %v229_v4 = vmov 32.0  }
   0xd   :  { %v50_v1 = vsel %vm49_vm0, %v45_v0, 0.0  ;;  %v53_v3 = vsel %vm49_vm0, %v46_v2, 0.0  ;;  %141 = vrcp.f32 %v229_v4  ;;  %v139_v35 = vld [vmem:[#allocation5] ss:$0 sm:$0xff]  ;;  %v140_v39 = vld [vmem:[%s277_s2] ss:$0 sm:$0xff] }
   0xe   :  { %51 = vadd.xlane.f32.xlu0 %v50_v1  ;;  %s230_s24 = smov [#allocation7]   ;;  %s119_s28 = sshll.u32 %s278_s3, 4  ;;  %s120_s28 = int_to_ptr.hbm [resolvable:$true] %s119_s28 }
   0xf   :  { %s117_s25 = sshll.u32 %s230_s24, 4  ;;  %s118_s25 = int_to_ptr.vmem [resolvable:$true] %s117_s25 }
  0x13   :  { %v142_v5 = vpop.eup %141 }
  0x14   :  { %v57_v6 = vmul.f32 32.0, %v142_v5  ;;  %vm61_vm1 = vweird.f32 %v142_v5 }
  0x16   :  { %54 = vadd.xlane.f32.xlu0 %v53_v3  ;;  %v58_v7 = vsub.f32 1.0, %v57_v6 }
  0x18   :  { %v59_v8 = vmul.f32 %v142_v5, %v58_v7 }
  0x1a   :  { %v60_v9 = vadd.f32 %v142_v5, %v59_v8 }
  0x1c   :  { %v62_v10 = vsel %vm61_vm1, %v142_v5, %v60_v9 }
  0x81   :  { %v52_v11 = vpop.xlane.xlu0 %51 }
  0x82   :  { %v63_v12 = vmul.f32 %v62_v10, %v52_v11 }
  0x84   :  { %v65_v13 = vsub.f32 %v45_v0, %v63_v12 }
  0x86   :  { %v67_v14 = vmul.f32 %v65_v13, %v65_v13 }
  0x88   :  { %v69_v15 = vsel %vm49_vm0, %v67_v14, 0.0 }
  0x89   :  { %70 = vadd.xlane.f32.xlu1 %v69_v15  ;;  %v55_v16 = vpop.xlane.xlu0 %54 }
  0x8a   :  { %v64_v17 = vmul.f32 %v62_v10, %v55_v16 }
  0x8c   :  { %v66_v18 = vsub.f32 %v46_v2, %v64_v17 }
  0x8e   :  { %v68_v19 = vmul.f32 %v66_v18, %v66_v18 }
  0x90   :  { %v72_v20 = vsel %vm49_vm0, %v68_v19, 0.0 }
  0x91   :  { %73 = vadd.xlane.f32.xlu1 %v72_v20 }
  0xfc   :  { %v71_v21 = vpop.xlane.xlu1 %70 }
  0xfd   :  { %v75_v22 = vmul.f32 %v71_v21, %v62_v10 }
  0xff   :  { %v77_v23 = vadd.f32 1e-12, %v75_v22 }
 0x101   :  { %143 = vrsqrt.f32 %v77_v23  ;;  %vm85_vm3 = vweird.f32 %v77_v23 }
 0x104   :  { %v74_v24 = vpop.xlane.xlu1 %73 }
 0x105   :  { %v76_v25 = vmul.f32 %v74_v24, %v62_v10 }
 0x107   :  { %v144_v26 = vpop.eup %143  ;;  %v78_v27 = vadd.f32 1e-12, %v76_v25 }
 0x108   :  { %v80_v28 = vmul.f32 %v144_v26, %v77_v23  ;;  %vm86_vm2 = vweird.f32 %v144_v26 }
 0x109   :  { %145 = vrsqrt.f32 %v78_v27  ;;  %vm87_vm4 = vmor %vm85_vm3, %vm86_vm2  ;;  %vm95_vm6 = vweird.f32 %v78_v27 }
 0x10a   :  { %v81_v29 = vmul.f32 %v144_v26, %v80_v28 }
 0x10c   :  { %v82_v30 = vmul.f32 0.5, %v81_v29 }
 0x10e   :  { %v83_v31 = vsub.f32 1.5, %v82_v30 }
 0x10f   :  { %v146_v32 = vpop.eup %145 }
 0x110   :  { %v84_v33 = vmul.f32 %v144_v26, %v83_v31  ;;  %v90_v34 = vmul.f32 %v146_v32, %v78_v27  ;;  %vm96_vm5 = vweird.f32 %v146_v32 }
 0x111   :  { %vm97_vm7 = vmor %vm95_vm6, %vm96_vm5 }
 0x112   :  { %v88_v36 = vsel %vm87_vm4, %v144_v26, %v84_v33  ;;  %v91_v37 = vmul.f32 %v146_v32, %v90_v34 }
 0x113   :  { %v99_v38 = vmul.f32 %v88_v36, %v65_v13 }
 0x114   :  { %v92_v40 = vmul.f32 0.5, %v91_v37 }
 0x115   :  { %v104_v41 = vmul.f32 %v139_v35, %v99_v38 }
 0x116   :  { %v93_v42 = vsub.f32 1.5, %v92_v40 }
 0x117   :  { %v109_v43 = vadd.f32 %v140_v39, %v104_v41 }
 0x118   :  { %v94_v44 = vmul.f32 %v146_v32, %v93_v42 }
 0x119   :  { %111 = vst.msk [vmem:[#allocation7] sm:$0xff] %vm49_vm0, %v109_v43 }
 0x11a   :  { %v98_v45 = vsel %vm97_vm7, %v146_v32, %v94_v44 }
 0x11b   :  { %v100_v46 = vmul.f32 %v98_v45, %v66_v18 }
 0x11d   :  { %v105_v47 = vmul.f32 %v139_v35, %v100_v46 }
 0x11f   :  { %v110_v48 = vadd.f32 %v140_v39, %v105_v47 }
 0x121   :  { %112 = vst.msk [vmem:[#allocation7 + $0x8] sm:$0xff] %vm49_vm0, %v110_v48 }
 0x122   :  { %125 = dma.vmem_to_hbm [thread:$0]  %s118_s25, 256, %s120_s28, [#allocation4], %s226_s20, %s226_s20, %s227_s21  }
 0x123   :  { %223 = dma.done.wait [#allocation4], 256  }
 0x124   :  { %224 = vsyncadd [#allocation4], 4294967040 }
 0x125   :  { %130 = vsyncpa [#allocation3], 1 }
 0x126   :  { %131 = vsyncpa [#allocation6], 1 }
 0x127   :  { %132 = vsyncpa [#allocation4], 1 }

</bundles_post_ra>
